<compile_context>
chip_gen: v7x
topology: tpu7x:2x2x1
jax: 0.10.0
libtpu: 0.0.40
codegen_flags: <defaults>
</compile_context>

<pallas_src>
import jax
import jax.numpy as jnp
from jax.experimental import pallas as pl
from jax.experimental.pallas import tpu as pltpu

INPUT_SIZE = 5                # category 'K3'
INPUT_PAD = 8                 # sublane-aligned padded feature count
HIDDEN = 128
MAX_BATCH_TILE = 1024         # per review: sweep 1024-2048; 1024 chosen
MIN_BATCH_TILE = 256          # multiple of 256 (v6e/v7x MXU) and of 128 (v5e)
MATMUL_DTYPE = jnp.bfloat16   # MXU operand dtype; accumulation stays f32

# Packed (8,128) small-operand slab row indices.
_ROW_B1, _ROW_SHIFT2, _ROW_B3, _ROW_W4 = 0, 1, 2, 3


def _elementwise_dtype():
    """bf16 elementwise on v6e/v7x (bf16 VALU/EUP); f32 on v5e (no bf16 VPU)."""
    try:
        kind = jax.devices()[0].device_kind.lower()
    except Exception:
        kind = ""
    if "v5" in kind:
        return jnp.float32
    return jnp.bfloat16


def _pick_batch_tile(batch):
    """Static tile choice: big tiles to amortize per-step overhead, but keep
    >= 2 grid tiles for large batches so both v7x TensorCores are used."""
    padded = -(-batch // MIN_BATCH_TILE) * MIN_BATCH_TILE
    if padded <= MIN_BATCH_TILE:
        return MIN_BATCH_TILE
    half = (padded // 2 // MIN_BATCH_TILE) * MIN_BATCH_TILE
    return max(MIN_BATCH_TILE, min(MAX_BATCH_TILE, half))


def _make_kernel(ew_dtype):
    """Build the kernel specialized on the elementwise dtype (static choice)."""
    ew_is_f32 = (ew_dtype == jnp.float32)

    def silu(h):
        if ew_is_f32:
            # v5e: route the divide through the approx EUP reciprocal.
            return h * pl.reciprocal(1.0 + jnp.exp(-h), approx=True)
        return h * jax.nn.sigmoid(h)

    def kernel(x_ref, w1_ref, w2_ref, w3_ref, vec_ref, b4_ref, o_ref):
        """One batch tile: x_ref (BT, INPUT_PAD) -> o_ref (1, 1, BT)."""
        # Unpack the consolidated (8,128) small-operand slab (static row slices).
        b1 = vec_ref[_ROW_B1:_ROW_B1 + 1, :].astype(ew_dtype)
        shift2 = vec_ref[_ROW_SHIFT2:_ROW_SHIFT2 + 1, :].astype(ew_dtype)
        b3 = vec_ref[_ROW_B3:_ROW_B3 + 1, :].astype(ew_dtype)
        w4 = vec_ref[_ROW_W4:_ROW_W4 + 1, :].astype(MATMUL_DTYPE)

        # Linear(in,128) + SiLU  (kept on the MXU despite K=8: MXU has slack).
        h = jnp.dot(x_ref[...], w1_ref[...], preferred_element_type=jnp.float32)
        h = silu(h.astype(ew_dtype) + b1)

        # Linear(128,128) with BatchNorm1d folded into w2/shift2, + SiLU.
        h = jnp.dot(h.astype(MATMUL_DTYPE), w2_ref[...],
                    preferred_element_type=jnp.float32)
        h = silu(h.astype(ew_dtype) + shift2)

        # Linear(128,128) + Dropout(0.2) [identity in eval] + SiLU.
        h = jnp.dot(h.astype(MATMUL_DTYPE), w3_ref[...],
                    preferred_element_type=jnp.float32)
        h = silu(h.astype(ew_dtype) + b3)

        # Linear(128,1) as a transposed-RHS dot: (1,128) @ (BT,128)^T -> (1,BT),
        # landing directly in the lane-dense output layout.
        out_row = jax.lax.dot_general(
            w4, h.astype(MATMUL_DTYPE),
            dimension_numbers=(((1,), (1,)), ((), ())),
            preferred_element_type=jnp.float32)
        o_ref[0] = out_row + b4_ref[0]          # b4 is a scalar read from SMEM

    return kernel


def fnn_forward(x, params):
    """Forward pass. x: (B, INPUT_SIZE) float32 -> (B, 1) float32."""
    (w1, b1, w2, b2, bn_scale, bn_shift, w3, b3, w4, b4) = params
    B, D = x.shape
    assert D == INPUT_SIZE

    tile = _pick_batch_tile(B)
    num_tiles = pl.cdiv(B, tile)
    Bp = num_tiles * tile
    ew_dtype = _elementwise_dtype()

    # One-time layout plumbing (wrapper side):
    #  * pad batch to a tile multiple, pad features 5 -> 8,
    #  * fold BatchNorm into layer 2,
    #  * cast MXU operands to bf16,
    #  * pack all (1,128) vectors into a single (8,128) f32 slab.
    xp = jnp.zeros((Bp, INPUT_PAD), MATMUL_DTYPE)
    xp = xp.at[:B, :D].set(x.astype(MATMUL_DTYPE))
    w1p = jnp.zeros((INPUT_PAD, HIDDEN), MATMUL_DTYPE)
    w1p = w1p.at[:D, :].set(w1.astype(MATMUL_DTYPE))

    # BatchNorm1d (eval) fold: y = dot(h, w2*scale) + (b2*scale + shift)
    w2f = (w2 * bn_scale).astype(MATMUL_DTYPE)            # column scale
    shift2 = (b2 * bn_scale + bn_shift).astype(jnp.float32)
    w3c = w3.astype(MATMUL_DTYPE)

    vec = jnp.zeros((8, HIDDEN), jnp.float32)
    vec = vec.at[_ROW_B1].set(b1.reshape(HIDDEN).astype(jnp.float32))
    vec = vec.at[_ROW_SHIFT2].set(shift2.reshape(HIDDEN))
    vec = vec.at[_ROW_B3].set(b3.reshape(HIDDEN).astype(jnp.float32))
    vec = vec.at[_ROW_W4].set(w4.reshape(HIDDEN).astype(jnp.float32))

    b4v = b4.reshape((1,)).astype(jnp.float32)             # scalar -> SMEM

    rep = lambda shape: pl.BlockSpec(shape, lambda i: (0, 0))

    out = pl.pallas_call(
        _make_kernel(ew_dtype),
        out_shape=jax.ShapeDtypeStruct((num_tiles, 1, tile), jnp.float32),
        grid_spec=pltpu.PrefetchScalarGridSpec(
            num_scalar_prefetch=0,
            grid=(num_tiles,),
            in_specs=[
                pl.BlockSpec((tile, INPUT_PAD), lambda i: (i, 0)),  # x
                rep((INPUT_PAD, HIDDEN)),     # w1 (padded)
                rep((HIDDEN, HIDDEN)),        # w2 (BN-folded)
                rep((HIDDEN, HIDDEN)),        # w3
                rep((8, HIDDEN)),             # packed b1/shift2/b3/w4 slab
                pl.BlockSpec(memory_space=pltpu.MemorySpace.SMEM),  # b4 scalar
            ],
            out_specs=pl.BlockSpec((1, 1, tile), lambda i: (i, 0, 0)),
        ),
        compiler_params=pltpu.CompilerParams(
            dimension_semantics=("parallel",)),
    )(xp, w1p, w2f, w3c, vec, b4v)

    # Lane-dense slab -> (B, 1); padded rows dropped.
    return out.reshape((Bp, 1))[:B]


def init_params(key):
    """Deterministic init mimicking PyTorch Linear defaults
    (uniform(+-1/sqrt(fan_in))) and default BatchNorm1d state
    (gamma=1, beta=0, running_mean=0, running_var=1, eps=1e-5)."""
    ks = jax.random.split(key, 8)

    def linear(kw, kb, fan_in, fan_out):
        bound = 1.0 / jnp.sqrt(fan_in)
        w = jax.random.uniform(kw, (fan_in, fan_out), jnp.float32, -bound, bound)
        b = jax.random.uniform(kb, (1, fan_out), jnp.float32, -bound, bound)
        return w, b

    w1, b1 = linear(ks[0], ks[1], INPUT_SIZE, HIDDEN)
    w2, b2 = linear(ks[2], ks[3], HIDDEN, HIDDEN)
    w3, b3 = linear(ks[4], ks[5], HIDDEN, HIDDEN)

    # Final layer stored in PyTorch's native (out=1, in=128) row layout + scalar bias.
    bound4 = 1.0 / jnp.sqrt(HIDDEN)
    w4 = jax.random.uniform(ks[6], (1, HIDDEN), jnp.float32, -bound4, bound4)
    b4 = jax.random.uniform(ks[7], (1,), jnp.float32, -bound4, bound4)

    # BatchNorm1d eval-mode fold inputs: y = (x - mean)/sqrt(var+eps)*gamma + beta
    gamma = jnp.ones((1, HIDDEN), jnp.float32)
    beta = jnp.zeros((1, HIDDEN), jnp.float32)
    running_mean = jnp.zeros((1, HIDDEN), jnp.float32)
    running_var = jnp.ones((1, HIDDEN), jnp.float32)
    eps = 1e-5
    bn_scale = gamma / jnp.sqrt(running_var + eps)
    bn_shift = beta - running_mean * bn_scale

    return (w1, b1, w2, b2, bn_scale, bn_shift, w3, b3, w4, b4)


def reference_forward_f32(x, params):
    """Pure-f32 plain-JAX reference (PyTorch-faithful math)."""
    (w1, b1, w2, b2, bn_scale, bn_shift, w3, b3, w4, b4) = params
    silu = lambda h: h * jax.nn.sigmoid(h)
    h = silu(x @ w1 + b1)
    h = silu((h @ w2 + b2) * bn_scale + bn_shift)
    h = silu(h @ w3 + b3)
    return h @ w4.T + b4


def reference_forward_mixed(x, params, mm_dt=MATMUL_DTYPE, ew_dt=jnp.float32):
    """Plain-JAX reference mirroring the kernel's dtype plan
    (bf16 matmul operands, f32 accumulation, elementwise in ew_dt,
    BatchNorm folded into layer 2)."""
    (w1, b1, w2, b2, bn_scale, bn_shift, w3, b3, w4, b4) = params
    w2f = w2 * bn_scale
    shift2 = b2 * bn_scale + bn_shift
    silu = lambda h: h * jax.nn.sigmoid(h)
    dot = lambda a, w: jnp.dot(a.astype(mm_dt), w.astype(mm_dt),
                               preferred_element_type=jnp.float32)
    h = silu(dot(x, w1).astype(ew_dt) + b1.astype(ew_dt))
    h = silu(dot(h, w2f).astype(ew_dt) + shift2.astype(ew_dt))
    h = silu(dot(h, w3).astype(ew_dt) + b3.astype(ew_dt))
    return dot(h, w4.T) + b4


if __name__ == "__main__":
    key = jax.random.PRNGKey(0)
    k_param, k_x = jax.random.split(key)

    params = init_params(k_param)
    batch = 16                       # small, deliberately ragged vs. the tile
    x = jax.random.normal(k_x, (batch, INPUT_SIZE), jnp.float32)

    fwd = jax.jit(fnn_forward)
    out = jax.block_until_ready(fwd(x, params))
    assert out.shape == (batch, 1)

    ew_dt = _elementwise_dtype()
    ref_mix = reference_forward_mixed(x, params, ew_dt=ew_dt)  # kernel dtype plan
    ref_f32 = reference_forward_f32(x, params)                 # PyTorch-faithful
    assert jnp.allclose(out, ref_mix, atol=1e-2, rtol=1e-2), \
        "mismatch vs mixed-precision reference"
    assert jnp.allclose(out, ref_f32, atol=7e-2, rtol=7e-2), \
        "mismatch vs f32 reference"

    print("KERNEL_OK")
</pallas_src>

<mosaic_0001>
module attributes {stable_mosaic.version = 11 : i64} {
  func.func @kernel(%arg0: i32, %arg1: memref<256x8xbf16, #tpu.memory_space<vmem>>, %arg2: memref<8x128xbf16, #tpu.memory_space<vmem>>, %arg3: memref<128x128xbf16, #tpu.memory_space<vmem>>, %arg4: memref<128x128xbf16, #tpu.memory_space<vmem>>, %arg5: memref<8x128xf32, #tpu.memory_space<vmem>>, %arg6: memref<1xf32, #tpu.memory_space<smem>>, %arg7: memref<1x1x256xf32, #tpu.memory_space<vmem>>) attributes {dimension_semantics = [#tpu.dimension_semantics<parallel>], iteration_bounds = array<i64: 1>, scalar_prefetch = 0 : i64, scratch_operands = 0 : i64, tpu.core_type = #tpu.core_type<tc>, window_params = [{transform_indices = @transform_0, window_bounds = array<i64: 256, 8>}, {pipeline_mode = #tpu.pipeline_mode<synchronous>, transform_indices = @transform_1, window_bounds = array<i64: 8, 128>}, {pipeline_mode = #tpu.pipeline_mode<synchronous>, transform_indices = @transform_2, window_bounds = array<i64: 128, 128>}, {pipeline_mode = #tpu.pipeline_mode<synchronous>, transform_indices = @transform_3, window_bounds = array<i64: 128, 128>}, {pipeline_mode = #tpu.pipeline_mode<synchronous>, transform_indices = @transform_4, window_bounds = array<i64: 8, 128>}, {transform_indices = @transform_5, window_bounds = array<i64: 1>}, {transform_indices = @transform_6, window_bounds = array<i64: 1, 1, 256>}]} {
    %c0 = arith.constant 0 : index
    %c0_0 = arith.constant 0 : index
    %0 = vector.load %arg5[%c0, %c0_0] : memref<8x128xf32, #tpu.memory_space<vmem>>, vector<1x128xf32>
    %1 = arith.truncf %0 : vector<1x128xf32> to vector<1x128xbf16>
    %c1 = arith.constant 1 : index
    %c0_1 = arith.constant 0 : index
    %2 = vector.load %arg5[%c1, %c0_1] : memref<8x128xf32, #tpu.memory_space<vmem>>, vector<1x128xf32>
    %3 = arith.truncf %2 : vector<1x128xf32> to vector<1x128xbf16>
    %c2 = arith.constant 2 : index
    %c0_2 = arith.constant 0 : index
    %4 = vector.load %arg5[%c2, %c0_2] : memref<8x128xf32, #tpu.memory_space<vmem>>, vector<1x128xf32>
    %5 = arith.truncf %4 : vector<1x128xf32> to vector<1x128xbf16>
    %c3 = arith.constant 3 : index
    %c0_3 = arith.constant 0 : index
    %6 = vector.load %arg5[%c3, %c0_3] : memref<8x128xf32, #tpu.memory_space<vmem>>, vector<1x128xf32>
    %7 = arith.truncf %6 : vector<1x128xf32> to vector<1x128xbf16>
    %c0_4 = arith.constant 0 : index
    %c0_5 = arith.constant 0 : index
    %8 = vector.load %arg1[%c0_4, %c0_5] : memref<256x8xbf16, #tpu.memory_space<vmem>>, vector<256x8xbf16>
    %c0_6 = arith.constant 0 : index
    %c0_7 = arith.constant 0 : index
    %9 = vector.load %arg2[%c0_6, %c0_7] : memref<8x128xbf16, #tpu.memory_space<vmem>>, vector<8x128xbf16>
    %cst = arith.constant dense<0.000000e+00> : vector<256x128xf32>
    %10 = tpu.matmul %8, %9, %cst {dimension_numbers = #tpu.dot_dimension_numbers<[1], [0], [0], [1], [0, 0, 1, 1], [], []>} : vector<256x8xbf16>, vector<8x128xbf16>, vector<256x128xf32> -> vector<256x128xf32>
    %11 = arith.truncf %10 : vector<256x128xf32> to vector<256x128xbf16>
    %12 = vector.broadcast %1 : vector<1x128xbf16> to vector<256x128xbf16>
    %13 = arith.addf %11, %12 : vector<256x128xbf16>
    %14 = arith.negf %13 : vector<256x128xbf16>
    %15 = math.exp %14 : vector<256x128xbf16>
    %cst_8 = arith.constant 1.000000e+00 : bf16
    %16 = vector.broadcast %cst_8 : bf16 to vector<256x128xbf16>
    %17 = arith.addf %16, %15 : vector<256x128xbf16>
    %18 = arith.divf %16, %17 : vector<256x128xbf16>
    %19 = arith.mulf %13, %18 : vector<256x128xbf16>
    %c0_9 = arith.constant 0 : index
    %c0_10 = arith.constant 0 : index
    %20 = vector.load %arg3[%c0_9, %c0_10] : memref<128x128xbf16, #tpu.memory_space<vmem>>, vector<128x128xbf16>
    %cst_11 = arith.constant dense<0.000000e+00> : vector<256x128xf32>
    %21 = tpu.matmul %19, %20, %cst_11 {dimension_numbers = #tpu.dot_dimension_numbers<[1], [0], [0], [1], [0, 0, 1, 1], [], []>} : vector<256x128xbf16>, vector<128x128xbf16>, vector<256x128xf32> -> vector<256x128xf32>
    %22 = arith.truncf %21 : vector<256x128xf32> to vector<256x128xbf16>
    %23 = vector.broadcast %3 : vector<1x128xbf16> to vector<256x128xbf16>
    %24 = arith.addf %22, %23 : vector<256x128xbf16>
    %25 = arith.negf %24 : vector<256x128xbf16>
    %26 = math.exp %25 : vector<256x128xbf16>
    %cst_12 = arith.constant 1.000000e+00 : bf16
    %27 = vector.broadcast %cst_12 : bf16 to vector<256x128xbf16>
    %28 = arith.addf %27, %26 : vector<256x128xbf16>
    %29 = arith.divf %27, %28 : vector<256x128xbf16>
    %30 = arith.mulf %24, %29 : vector<256x128xbf16>
    %c0_13 = arith.constant 0 : index
    %c0_14 = arith.constant 0 : index
    %31 = vector.load %arg4[%c0_13, %c0_14] : memref<128x128xbf16, #tpu.memory_space<vmem>>, vector<128x128xbf16>
    %cst_15 = arith.constant dense<0.000000e+00> : vector<256x128xf32>
    %32 = tpu.matmul %30, %31, %cst_15 {dimension_numbers = #tpu.dot_dimension_numbers<[1], [0], [0], [1], [0, 0, 1, 1], [], []>} : vector<256x128xbf16>, vector<128x128xbf16>, vector<256x128xf32> -> vector<256x128xf32>
    %33 = arith.truncf %32 : vector<256x128xf32> to vector<256x128xbf16>
    %34 = vector.broadcast %5 : vector<1x128xbf16> to vector<256x128xbf16>
    %35 = arith.addf %33, %34 : vector<256x128xbf16>
    %36 = arith.negf %35 : vector<256x128xbf16>
    %37 = math.exp %36 : vector<256x128xbf16>
    %cst_16 = arith.constant 1.000000e+00 : bf16
    %38 = vector.broadcast %cst_16 : bf16 to vector<256x128xbf16>
    %39 = arith.addf %38, %37 : vector<256x128xbf16>
    %40 = arith.divf %38, %39 : vector<256x128xbf16>
    %41 = arith.mulf %35, %40 : vector<256x128xbf16>
    %cst_17 = arith.constant dense<0.000000e+00> : vector<1x256xf32>
    %42 = tpu.matmul %7, %41, %cst_17 {dimension_numbers = #tpu.dot_dimension_numbers<[1], [1], [0], [0], [0, 0, 1, 0], [], []>} : vector<1x128xbf16>, vector<256x128xbf16>, vector<1x256xf32> -> vector<1x256xf32>
    %c0_18 = arith.constant 0 : index
    %43 = memref.load %arg6[%c0_18] : memref<1xf32, #tpu.memory_space<smem>>
    %44 = vector.broadcast %43 : f32 to vector<1x256xf32>
    %45 = arith.addf %42, %44 : vector<1x256xf32>
    %c0_19 = arith.constant 0 : index
    %c0_20 = arith.constant 0 : index
    %c0_21 = arith.constant 0 : index
    %46 = vector.load %arg7[%c0_19, %c0_20, %c0_21] : memref<1x1x256xf32, #tpu.memory_space<vmem>>, vector<1x1x256xf32>
    %47 = vector.shape_cast %46 : vector<1x1x256xf32> to vector<1x256xf32>
    %48 = vector.shape_cast %45 : vector<1x256xf32> to vector<1x1x256xf32>
    tpu.vector_store %arg7[%c0_19, %c0_20, %c0_21], %48 {strides = array<i32>} : memref<1x1x256xf32, #tpu.memory_space<vmem>>, vector<1x1x256xf32>,
    return
  }
  func.func @transform_0(%arg0: i32) -> (i32, i32) {
    %c0_i32 = arith.constant 0 : i32
    %c0_i32_0 = arith.constant 0 : i32
    return %arg0, %c0_i32 : i32, i32
  }
  func.func @transform_1(%arg0: i32) -> (i32, i32) {
    %c0_i32 = arith.constant 0 : i32
    %c0_i32_0 = arith.constant 0 : i32
    %c0_i32_1 = arith.constant 0 : i32
    return %c0_i32, %c0_i32_0 : i32, i32
  }
  func.func @transform_2(%arg0: i32) -> (i32, i32) {
    %c0_i32 = arith.constant 0 : i32
    %c0_i32_0 = arith.constant 0 : i32
    %c0_i32_1 = arith.constant 0 : i32
    return %c0_i32, %c0_i32_0 : i32, i32
  }
  func.func @transform_3(%arg0: i32) -> (i32, i32) {
    %c0_i32 = arith.constant 0 : i32
    %c0_i32_0 = arith.constant 0 : i32
    %c0_i32_1 = arith.constant 0 : i32
    return %c0_i32, %c0_i32_0 : i32, i32
  }
  func.func @transform_4(%arg0: i32) -> (i32, i32) {
    %c0_i32 = arith.constant 0 : i32
    %c0_i32_0 = arith.constant 0 : i32
    %c0_i32_1 = arith.constant 0 : i32
    return %c0_i32, %c0_i32_0 : i32, i32
  }
  func.func @transform_5(%arg0: i32) -> i32 {
    %c0_i32 = arith.constant 0 : i32
    %c0_i32_0 = arith.constant 0 : i32
    return %c0_i32 : i32
  }
  func.func @transform_6(%arg0: i32) -> (i32, i32, i32) {
    %c0_i32 = arith.constant 0 : i32
    %c0_i32_0 = arith.constant 0 : i32
    %c0_i32_1 = arith.constant 0 : i32
    return %arg0, %c0_i32, %c0_i32_0 : i32, i32, i32
  }
}

</mosaic_0001>

<bundles_post_ra>
// kernel: fnn_forward.1
= control target key start
LH: loop header
LB: loop body
LE: loop exit
PB: predicated region body
PF: predicated region fallthrough
CT: control target
= control target key end

     0   :  { %vm196_vm0 = vcmask 1043456   ;;  %vm147_vm1 = vcmask 64512   ;;  %v380_v26 = vlaneseq  ;;  %s2410_s1 = inlined_call_operand.vmem [shape: bf16[8,128], index: 1, kind: input, shape index: {}]   ;;  %s2411_s0 = inlined_call_operand.vmem [shape: bf16[256,8], index: 0, kind: input, shape index: {}]   ;;  %s2412_s2 = inlined_call_operand.vmem [shape: bf16[128,128], index: 2, kind: input, shape index: {}]   ;;  %s2413_s4 = inlined_call_operand.vmem [shape: f32[8,128], index: 4, kind: input, shape index: {}]   ;;  %s2414_s3 = inlined_call_operand.vmem [shape: bf16[128,128], index: 3, kind: input, shape index: {}]   ;;  %s2415_s5 = inlined_call_operand.<no memory space> [shape: f32[1], index: 5, kind: input, shape index: {}]   ;;  %s2416_s6 = inlined_call_operand.vmem [shape: f32[1,1,256], index: 6, kind: output, shape index: {}]  }
   0x1   :  { %v66_v0 = vld [vmem:[%s2410_s1] sm:$0xf]  ;;  %v1698_v4 = vld [vmem:[%s2411_s0 + $0x8] sm:$0xff]   ;;  %v1700_v6 = vld [vmem:[%s2411_s0 + $0x10] sm:$0xff]  }
   0x2   :  { %1693 = vmatprep.subr.msk.bf16.mxu0 %vm196_vm0, %v66_v0  ;;  %1694 = vmatprep.subr.msk.bf16.mxu1 %vm196_vm0, %v66_v0  ;;  %v198_v1 = vsel %vm196_vm0, %v66_v0, 0  ;;  %v1696_v2 = vld [vmem:[%s2411_s0] sm:$0xff]   ;;  %v1699_v5 = vld [vmem:[%s2411_s0 + $0x48] sm:$0xff]   ;;  %v1702_v7 = vld [vmem:[%s2411_s0 + $0x50] sm:$0xff]   ;;  %v2051_v29 = vshrl.u32 %v380_v26, 7  ;;  %vm1375_vm2 = vcmp.lt.s32.totalorder %v380_v26, 256 }
   0x3   :  { %1562 = vmatpush3.bf16.msra.mxu0 %v198_v1  ;;  %1692 = vmatpush3.bf16.msra.mxu1 %v198_v1  ;;  %v1697_v3 = vld [vmem:[%s2411_s0 + $0x40] sm:$0xff]   ;;  %v1701_v8 = vld [vmem:[%s2411_s0 + $0x18] sm:$0xff]   ;;  %v1705_v12 = vld [vmem:[%s2411_s0 + $0x28] sm:$0xff]  }
   0x4   :  { %1563 = vmatprep.mubr.msk.bf16.mxu0 %vm147_vm1, %v1696_v2  ;;  %1579 = vmatprep.mubr.msk.bf16.mxu1 %vm147_vm1, %v1697_v3  ;;  %v1703_v9 = vld [vmem:[%s2411_s0 + $0x20] sm:$0xff]   ;;  %v1704_v10 = vld [vmem:[%s2411_s0 + $0x58] sm:$0xff]   ;;  %v1706_v13 = vld [vmem:[%s2411_s0 + $0x30] sm:$0xff]   ;;  %v2054_v31 = vsub.s32 0, %v2051_v29 }
   0x5   :  { %v1708_v11 = vld [vmem:[%s2411_s0 + $0x60] sm:$0xff]   ;;  %v1709_v14 = vld [vmem:[%s2411_s0 + $0x68] sm:$0xff]   ;;  %v1710_v15 = vld [vmem:[%s2411_s0 + $0x70] sm:$0xff]  }
   0x6   :  { %1564 = vmatmul.mubr.msk.bf16.vlgmr.msra.gmra.mrb[0].mxu0 %vm147_vm1, %v1698_v4  ;;  %1580 = vmatmul.mubr.msk.bf16.vlgmr.msra.gmra.mrb[0].mxu1 %vm147_vm1, %v1699_v5  ;;  %v1707_v16 = vld [vmem:[%s2411_s0 + $0x38] sm:$0xff]   ;;  %v1712_v18 = vld [vmem:[%s2412_s2] sm:$0xff]   ;;  %v1713_v19 = vld [vmem:[%s2412_s2 + $0x8] sm:$0xff]  }
   0x7   :  { %1567 = vmatprep.mubr.msk.bf16.mxu0 %vm147_vm1, %v1700_v6  ;;  %1583 = vmatprep.mubr.msk.bf16.mxu1 %vm147_vm1, %v1702_v7  ;;  %v1711_v17 = vld [vmem:[%s2411_s0 + $0x78] sm:$0xff]   ;;  %v1714_v20 = vld [vmem:[%s2412_s2 + $0x10] sm:$0xff]   ;;  %v1716_v22 = vld [vmem:[%s2412_s2 + $0x20] sm:$0xff]  }
   0x8   :  { %1595 = vmatprep.subr.bf16.mxu1 %v1712_v18  ;;  %v1715_v21 = vld [vmem:[%s2412_s2 + $0x18] sm:$0xff]   ;;  %v1717_v23 = vld [vmem:[%s2412_s2 + $0x28] sm:$0xff]   ;;  %v1718_v24 = vld [vmem:[%s2412_s2 + $0x30] sm:$0xff]  }
   0x9   :  { %1596 = vmatpush3.bf16.msra.mxu1 %v1712_v18  ;;  %v1719_v25 = vld [vmem:[%s2412_s2 + $0x38] sm:$0xff]   ;;  %v26_v27 = vld [vmem:[%s2413_s4] sm:$0x1] }
   0xa   :  { %1597 = vmatprep.subr.bf16.mxu1 %v1713_v19  ;;  %v27_v28 = vpack.c.bf16 %v26_v27, %v26_v27 }
   0xc   :  { %v378_v30 = vpack.i.b16 %v27_v28, %v27_v28 }
   0xd   :  { %1598 = vmatpush3.bf16.msra.mxu1 %v1713_v19 }
   0xe   :  { %1568 = vmatmul.mubr.msk.bf16.gmra.mrb[4].mxu0 %vm147_vm1, %v1701_v8  ;;  %1584 = vmatmul.mubr.msk.bf16.gmra.mrb[4].mxu1 %vm147_vm1, %v1704_v10  ;;  %v2059_v35 = vrot.slane %v378_v30, %v2054_v31 }
   0xf   :  { %1571 = vmatprep.mubr.msk.bf16.mxu0 %vm147_vm1, %v1703_v9  ;;  %1587 = vmatprep.mubr.msk.bf16.mxu1 %vm147_vm1, %v1708_v11 }
  0x10   :  { %1599 = vmatprep.subr.bf16.mxu1 %v1714_v20 }
  0x11   :  { %1600 = vmatpush3.bf16.msra.mxu1 %v1714_v20 }
  0x12   :  { %1601 = vmatprep.subr.bf16.mxu1 %v1715_v21 }
  0x15   :  { %1602 = vmatpush3.bf16.msra.mxu1 %v1715_v21 }
  0x16   :  { %1572 = vmatmul.mubr.msk.bf16.gmra.mrb[8].mxu0 %vm147_vm1, %v1705_v12  ;;  %1588 = vmatmul.mubr.msk.bf16.gmra.mrb[8].mxu1 %vm147_vm1, %v1709_v14 }
  0x17   :  { %1575 = vmatprep.mubr.msk.bf16.mxu0 %vm147_vm1, %v1706_v13  ;;  %1591 = vmatprep.mubr.msk.bf16.mxu1 %vm147_vm1, %v1710_v15 }
  0x18   :  { %1603 = vmatprep.subr.bf16.mxu1 %v1716_v22 }
  0x19   :  { %1604 = vmatpush3.bf16.msra.mxu1 %v1716_v22 }
  0x1a   :  { %1605 = vmatprep.subr.bf16.mxu1 %v1717_v23 }
  0x1d   :  { %1606 = vmatpush3.bf16.msra.mxu1 %v1717_v23 }
  0x1e   :  { %1576 = vmatmul.mubr.msk.bf16.gmra.mrb[12].mxu0 %vm147_vm1, %v1707_v16  ;;  %1592 = vmatmul.mubr.msk.bf16.gmra.mrb[12].mxu1 %vm147_vm1, %v1711_v17 }
  0x1f   :  { %1607 = vmatprep.subr.bf16.mxu1 %v1718_v24 }
  0x21   :  { %1608 = vmatpush3.bf16.msra.mxu1 %v1718_v24 }
  0x22   :  { %1609 = vmatprep.subr.bf16.mxu1 %v1719_v25 }
  0x25   :  { %1610 = vmatpush3.bf16.msra.mxu1 %v1719_v25 }
  0xd9   :  { %v1565_v32 = vpop.f32.mrb[0].mxu0  ;;  %v2056_v33 = vpop.f32.mrb[0].mxu1 }
  0xda   :  { %v234_v34 = vpop.f32.mrb[1].mxu0  ;;  %v298_v36 = vpop.f32.mrb[1].mxu1 }
  0xdb   :  { %v1566_v37 = vpop.f32.mrb[2].mxu0  ;;  %v2061_v39 = vpop.f32.mrb[2].mxu1 }
  0xdc   :  { %v362_v38 = vpack.c.bf16 %v1566_v37, %v1565_v32  ;;  %v237_v40 = vpop.f32.mrb[3].mxu0  ;;  %v370_v41 = vpack.c.bf16 %v2061_v39, %v2056_v33  ;;  %v301_v43 = vpop.f32.mrb[3].mxu1 }
  0xdd   :  { %v361_v42 = vpack.c.bf16 %v237_v40, %v234_v34  ;;  %v369_v45 = vpack.c.bf16 %v301_v43, %v298_v36 }
  0xde   :  { %v2066_v44 = vadd.bf16 %v2059_v35, %v362_v38  ;;  %v2115_v43 = vadd.bf16 %v2059_v35, %v370_v41 }
  0xdf   :  { %v2069_v46 = vadd.bf16 %v2059_v35, %v361_v42  ;;  %v2097_v17 = vadd.bf16 %v2059_v35, %v369_v45 }
  0xe0   :  { %v1415_v47 = vmul.bf16 3216621497, %v2066_v44  ;;  %v1423_v39 = vmul.bf16 3216621497, %v2115_v43 }
  0xe1   :  { %v1414_v48 = vmul.bf16 3216621497, %v2069_v46  ;;  %v1569_v49 = vpop.f32.mrb[4].mxu0  ;;  %v2073_v51 = vpop.f32.mrb[4].mxu1  ;;  %v1422_v25 = vmul.bf16 3216621497, %v2097_v17 }
  0xe2   :  { %1728 = vpow.bf16 %v1415_v47  ;;  %v250_v50 = vpop.f32.mrb[5].mxu0  ;;  %v314_v53 = vpop.f32.mrb[5].mxu1 }
  0xe3   :  { %v1570_v52 = vpop.f32.mrb[6].mxu0  ;;  %1730 = vpow.bf16 %v1414_v48  ;;  %v2075_v56 = vpop.f32.mrb[6].mxu1 }
  0xe4   :  { %v364_v54 = vpack.c.bf16 %v1570_v52, %v1569_v49  ;;  %v253_v55 = vpop.f32.mrb[7].mxu0  ;;  %v372_v58 = vpack.c.bf16 %v2075_v56, %v2073_v51  ;;  %v317_v59 = vpop.f32.mrb[7].mxu1 }
  0xe5   :  { %v363_v57 = vpack.c.bf16 %v253_v55, %v250_v50  ;;  %v371_v61 = vpack.c.bf16 %v317_v59, %v314_v53 }
  0xe6   :  { %v2080_v60 = vadd.bf16 %v2059_v35, %v364_v54  ;;  %v2134_v59 = vadd.bf16 %v2059_v35, %v372_v58 }
  0xe7   :  { %v2083_v62 = vadd.bf16 %v2059_v35, %v363_v57  ;;  %v2121_v50 = vadd.bf16 %v2059_v35, %v371_v61 }
  0xe8   :  { %v1417_v63 = vmul.bf16 3216621497, %v2080_v60 }
  0xe9   :  { %v1416_v0 = vmul.bf16 3216621497, %v2083_v62  ;;  %v1573_v1 = vpop.f32.mrb[8].mxu0  ;;  %v2087_v3 = vpop.f32.mrb[8].mxu1  ;;  %v1424_v54 = vmul.bf16 3216621497, %v2121_v50 }
  0xea   :  { %1732 = vpow.bf16 %v1417_v63  ;;  %v266_v2 = vpop.f32.mrb[9].mxu0  ;;  %v330_v5 = vpop.f32.mrb[9].mxu1 }
  0xeb   :  { %1734 = vpow.bf16 %v1416_v0  ;;  %v1574_v4 = vpop.f32.mrb[10].mxu0  ;;  %v2089_v8 = vpop.f32.mrb[10].mxu1 }
  0xec   :  { %v366_v6 = vpack.c.bf16 %v1574_v4, %v1573_v1  ;;  %v269_v7 = vpop.f32.mrb[11].mxu0  ;;  %v374_v11 = vpack.c.bf16 %v2089_v8, %v2087_v3  ;;  %v333_v12 = vpop.f32.mrb[11].mxu1 }
  0xed   :  { %v1729_v9 = vpop.eup %1728  ;;  %v365_v10 = vpack.c.bf16 %v269_v7, %v266_v2  ;;  %v373_v15 = vpack.c.bf16 %v333_v12, %v330_v5 }
  0xee   :  { %v465_v13 = vadd.bf16 1065369472, %v1729_v9  ;;  %v2094_v14 = vadd.bf16 %v2059_v35, %v366_v6  ;;  %v1731_v16 = vpop.eup %1730  ;;  %v1425_v9 = vmul.bf16 3216621497, %v2134_v59 }
  0xef   :  { %v2100_v18 = vadd.bf16 %v2059_v35, %v365_v10  ;;  %v464_v19 = vadd.bf16 1065369472, %v1731_v16  ;;  %v2137_v0 = vadd.bf16 %v2059_v35, %v373_v15 }
  0xf0   :  { %1736 = vrcp.bf16 %v465_v13  ;;  %v1419_v20 = vmul.bf16 3216621497, %v2094_v14 }
  0xf1   :  { %v1418_v21 = vmul.bf16 3216621497, %v2100_v18  ;;  %v1577_v22 = vpop.f32.mrb[12].mxu0  ;;  %1738 = vrcp.bf16 %v464_v19  ;;  %v2104_v24 = vpop.f32.mrb[12].mxu1  ;;  %v1426_v56 = vmul.bf16 3216621497, %v2137_v0 }
  0xf2   :  { %v282_v23 = vpop.f32.mrb[13].mxu0  ;;  %v346_v28 = vpop.f32.mrb[13].mxu1  ;;  %1740 = vpow.bf16 %v1419_v20 }
  0xf3   :  { %v1578_v27 = vpop.f32.mrb[14].mxu0  ;;  %v2107_v34 = vpop.f32.mrb[14].mxu1  ;;  %1742 = vpow.bf16 %v1418_v21 }
  0xf4   :  { %v368_v30 = vpack.c.bf16 %v1578_v27, %v1577_v22  ;;  %v285_v32 = vpop.f32.mrb[15].mxu0  ;;  %v376_v38 = vpack.c.bf16 %v2107_v34, %v2104_v24  ;;  %v349_v40 = vpop.f32.mrb[15].mxu1  ;;  %1744 = vpow.bf16 %v1422_v25 }
  0xf5   :  { %v1733_v36 = vpop.eup %1732  ;;  %v367_v37 = vpack.c.bf16 %v285_v32, %v282_v23  ;;  %v375_v48 = vpack.c.bf16 %v349_v40, %v346_v28 }
  0xf6   :  { %v1735_v42 = vpop.eup %1734  ;;  %v467_v45 = vadd.bf16 1065369472, %v1733_v36  ;;  %v2118_v47 = vadd.bf16 %v2059_v35, %v368_v30  ;;  %v2160_v30 = vadd.bf16 %v2059_v35, %v376_v38 }
  0xf7   :  { %v466_v49 = vadd.bf16 1065369472, %v1735_v42  ;;  %v2124_v52 = vadd.bf16 %v2059_v35, %v367_v37  ;;  %v2151_v16 = vadd.bf16 %v2059_v35, %v375_v48 }
  0xf8   :  { %1746 = vrcp.bf16 %v467_v45  ;;  %v1421_v53 = vmul.bf16 3216621497, %v2118_v47  ;;  %v1429_v42 = vmul.bf16 3216621497, %v2160_v30 }
  0xf9   :  { %1748 = vrcp.bf16 %v466_v49  ;;  %v1420_v33 = vmul.bf16 3216621497, %v2124_v52  ;;  %v1428_v8 = vmul.bf16 3216621497, %v2151_v16 }
  0xfa   :  { %1750 = vpow.bf16 %v1421_v53 }
  0xfb   :  { %v1737_v41 = vpop.eup %1736  ;;  %1752 = vpow.bf16 %v1420_v33 }
  0xfc   :  { %v1739_v55 = vpop.eup %1738  ;;  %v483_v57 = vmul.bf16 1065369472, %v1737_v41  ;;  %1754 = vpow.bf16 %v1423_v39 }
  0xfd   :  { %v481_v61 = vmul.bf16 1065369472, %v1739_v55  ;;  %v1741_v63 = vpop.eup %1740  ;;  %1756 = vpow.bf16 %v1424_v54 }
  0xfe   :  { %v1743_v1 = vpop.eup %1742  ;;  %v469_v2 = vadd.bf16 1065369472, %v1741_v63  ;;  %v513_v5 = vmul.bf16 %v483_v57, %v2066_v44  ;;  %v2147_v44 = vadd.bf16 %v2059_v35, %v374_v11 }
  0xff   :  { %v512_v4 = vmul.bf16 %v481_v61, %v2069_v46  ;;  %v468_v6 = vadd.bf16 1065369472, %v1743_v1  ;;  %v1745_v7 = vpop.eup %1744 }
 0x100   :  { %1758 = vrcp.bf16 %v469_v2  ;;  %v472_v10 = vadd.bf16 1065369472, %v1745_v7  ;;  %v1427_v3 = vmul.bf16 3216621497, %v2147_v44 }
 0x101   :  { %1611 = vmatprep.mubr.bf16.mxu1 %v512_v4  ;;  %1760 = vrcp.bf16 %v468_v6 }
 0x102   :  { %1612 = vmatmul.mubr.bf16.vlgmr.msra.gmra.mrb[16].mxu1 %v513_v5  ;;  %1762 = vpow.bf16 %v1425_v9 }
 0x103   :  { %v1747_v51 = vpop.eup %1746  ;;  %1764 = vpow.bf16 %v1426_v56 }
 0x104   :  { %v1749_v58 = vpop.eup %1748  ;;  %v487_v13 = vmul.bf16 1065369472, %v1747_v51  ;;  %1766 = vrcp.bf16 %v472_v10 }
 0x105   :  { %v485_v12 = vmul.bf16 1065369472, %v1749_v58  ;;  %v1751_v46 = vpop.eup %1750 }
 0x106   :  { %v1753_v19 = vpop.eup %1752  ;;  %v471_v20 = vadd.bf16 1065369472, %v1751_v46  ;;  %v515_v23 = vmul.bf16 %v487_v13, %v2080_v60 }
 0x107   :  { %v514_v15 = vmul.bf16 %v485_v12, %v2083_v62  ;;  %v1755_v21 = vpop.eup %1754  ;;  %v470_v22 = vadd.bf16 1065369472, %v1753_v19 }
 0x108   :  { %v1757_v25 = vpop.eup %1756  ;;  %1768 = vrcp.bf16 %v471_v20  ;;  %v473_v62 = vadd.bf16 1065369472, %v1755_v21  ;;  %v1724_v20 = vld [vmem:[%s2414_s3 + $0x20] sm:$0xff]   ;;  %v1725_v21 = vld [vmem:[%s2414_s3 + $0x28] sm:$0xff]  }
 0x109   :  { %1615 = vmatprep.mubr.bf16.mxu1 %v514_v15  ;;  %1770 = vrcp.bf16 %v470_v22  ;;  %v474_v27 = vadd.bf16 1065369472, %v1757_v25  ;;  %v1726_v22 = vld [vmem:[%s2414_s3 + $0x30] sm:$0xff]   ;;  %v28_v25 = vld [vmem:[%s2413_s4 + $0x1] sm:$0x1] }
 0x10a   :  { %1616 = vmatmul.mubr.bf16.gmra.mrb[20].mxu1 %v515_v23  ;;  %1772 = vpow.bf16 %v1427_v3  ;;  %v1727_v23 = vld [vmem:[%s2414_s3 + $0x38] sm:$0xff]   ;;  %v29_v3 = vpack.c.bf16 %v28_v25, %v28_v25 }
 0x10b   :  { %v1759_v11 = vpop.eup %1758  ;;  %1774 = vpow.bf16 %v1428_v8 }
 0x10c   :  { %v1761_v28 = vpop.eup %1760  ;;  %v491_v60 = vmul.bf16 1065369472, %v1759_v11  ;;  %1776 = vrcp.bf16 %v473_v62  ;;  %v770_v8 = vpack.i.b16 %v29_v3, %v29_v3 }
 0x10d   :  { %v489_v32 = vmul.bf16 1065369472, %v1761_v28  ;;  %v1763_v36 = vpop.eup %1762  ;;  %1778 = vrcp.bf16 %v474_v27 }
 0x10e   :  { %v1765_v40 = vpop.eup %1764  ;;  %v517_v45 = vmul.bf16 %v491_v60, %v2094_v14  ;;  %v475_v49 = vadd.bf16 1065369472, %v1763_v36  ;;  %1780 = vpow.bf16 %v1429_v42  ;;  %v2203_v27 = vrot.slane %v770_v8, %v2054_v31 }
 0x10f   :  { %v516_v37 = vmul.bf16 %v489_v32, %v2100_v18  ;;  %v1767_v48 = vpop.eup %1766  ;;  %v476_v35 = vadd.bf16 1065369472, %v1765_v40 }
 0x110   :  { %v497_v33 = vmul.bf16 1065369472, %v1767_v48  ;;  %1782 = vrcp.bf16 %v475_v49 }
 0x111   :  { %1619 = vmatprep.mubr.bf16.mxu1 %v516_v37  ;;  %1784 = vrcp.bf16 %v476_v35 }
 0x112   :  { %1620 = vmatmul.mubr.bf16.gmra.mrb[24].mxu1 %v517_v45  ;;  %v520_v55 = vmul.bf16 %v497_v33, %v2097_v17 }
 0x113   :  { %v1769_v24 = vpop.eup %1768 }
 0x114   :  { %v1771_v34 = vpop.eup %1770  ;;  %v495_v38 = vmul.bf16 1065369472, %v1769_v24 }
 0x115   :  { %v493_v53 = vmul.bf16 1065369472, %v1771_v34  ;;  %v1773_v39 = vpop.eup %1772 }
 0x116   :  { %v1775_v41 = vpop.eup %1774  ;;  %v519_v54 = vmul.bf16 %v495_v38, %v2118_v47  ;;  %v477_v61 = vadd.bf16 1065369472, %v1773_v39 }
 0x117   :  { %v518_v18 = vmul.bf16 %v493_v53, %v2124_v52  ;;  %v1777_v14 = vpop.eup %1776  ;;  %v478_v63 = vadd.bf16 1065369472, %v1775_v41 }
 0x118   :  { %v1779_v57 = vpop.eup %1778  ;;  %v499_v1 = vmul.bf16 1065369472, %v1777_v14  ;;  %1786 = vrcp.bf16 %v477_v61 }
 0x119   :  { %1623 = vmatprep.mubr.bf16.mxu1 %v518_v18  ;;  %v501_v2 = vmul.bf16 1065369472, %v1779_v57  ;;  %v1781_v4 = vpop.eup %1780  ;;  %1788 = vrcp.bf16 %v478_v63 }
 0x11a   :  { %1624 = vmatmul.mubr.bf16.gmra.mrb[28].mxu1 %v519_v54  ;;  %v521_v5 = vmul.bf16 %v499_v1, %v2115_v43  ;;  %v479_v7 = vadd.bf16 1065369472, %v1781_v4 }
 0x11b   :  { %1627 = vmatprep.mubr.bf16.mxu1 %v520_v55  ;;  %v1783_v52 = vpop.eup %1782  ;;  %v522_v6 = vmul.bf16 %v501_v2, %v2121_v50 }
 0x11c   :  { %v1785_v47 = vpop.eup %1784  ;;  %v503_v17 = vmul.bf16 1065369472, %v1783_v52  ;;  %1790 = vrcp.bf16 %v479_v7 }
 0x11d   :  { %v505_v9 = vmul.bf16 1065369472, %v1785_v47 }
 0x11e   :  { %v523_v51 = vmul.bf16 %v503_v17, %v2134_v59  ;;  %v1720_v59 = vld [vmem:[%s2414_s3] sm:$0xff]  }
 0x11f   :  { %v524_v58 = vmul.bf16 %v505_v9, %v2137_v0  ;;  %1643 = vmatprep.subr.bf16.mxu0 %v1720_v59  ;;  %v1721_v0 = vld [vmem:[%s2414_s3 + $0x8] sm:$0xff]  }
 0x120   :  { %1644 = vmatpush3.bf16.msra.mxu0 %v1720_v59 }
 0x121   :  { %1645 = vmatprep.subr.bf16.mxu0 %v1721_v0 }
 0x122   :  { %1628 = vmatmul.mubr.bf16.gmra.mrb[32].mxu1 %v521_v5 }
 0x123   :  { %1631 = vmatprep.mubr.bf16.mxu1 %v522_v6  ;;  %v1787_v56 = vpop.eup %1786 }
 0x124   :  { %v1789_v10 = vpop.eup %1788  ;;  %v507_v12 = vmul.bf16 1065369472, %v1787_v56  ;;  %1646 = vmatpush3.bf16.msra.mxu0 %v1721_v0 }
 0x125   :  { %v509_v43 = vmul.bf16 1065369472, %v1789_v10 }
 0x126   :  { %v525_v13 = vmul.bf16 %v507_v12, %v2147_v44  ;;  %v1722_v44 = vld [vmem:[%s2414_s3 + $0x10] sm:$0xff]  }
 0x127   :  { %v1791_v50 = vpop.eup %1790  ;;  %v526_v46 = vmul.bf16 %v509_v43, %v2151_v16  ;;  %1647 = vmatprep.subr.bf16.mxu0 %v1722_v44  ;;  %v1723_v16 = vld [vmem:[%s2414_s3 + $0x18] sm:$0xff]  }
 0x128   :  { %v511_v15 = vmul.bf16 1065369472, %v1791_v50  ;;  %1648 = vmatpush3.bf16.msra.mxu0 %v1722_v44 }
 0x129   :  { %1649 = vmatprep.subr.bf16.mxu0 %v1723_v16 }
 0x12a   :  { %1632 = vmatmul.mubr.bf16.gmra.mrb[36].mxu1 %v523_v51  ;;  %v527_v19 = vmul.bf16 %v511_v15, %v2160_v30 }
 0x12b   :  { %1635 = vmatprep.mubr.bf16.mxu1 %v524_v58 }
 0x12c   :  { %1650 = vmatpush3.bf16.msra.mxu0 %v1723_v16 }
 0x12d   :  { %1651 = vmatprep.subr.bf16.mxu0 %v1724_v20 }
 0x130   :  { %1652 = vmatpush3.bf16.msra.mxu0 %v1724_v20 }
 0x131   :  { %1653 = vmatprep.subr.bf16.mxu0 %v1725_v21 }
 0x132   :  { %1636 = vmatmul.mubr.bf16.gmra.mrb[40].mxu1 %v525_v13 }
 0x133   :  { %1639 = vmatprep.mubr.bf16.mxu1 %v526_v46 }
 0x134   :  { %1654 = vmatpush3.bf16.msra.mxu0 %v1725_v21 }
 0x135   :  { %1655 = vmatprep.subr.bf16.mxu0 %v1726_v22 }
 0x138   :  { %1656 = vmatpush3.bf16.msra.mxu0 %v1726_v22 }
 0x139   :  { %1657 = vmatprep.subr.bf16.mxu0 %v1727_v23 }
 0x13a   :  { %1640 = vmatmul.mubr.bf16.gmra.mrb[44].mxu1 %v527_v19 }
 0x13c   :  { %1658 = vmatpush3.bf16.msra.mxu0 %v1727_v23 }
 0x1d5   :  { %v1613_v62 = vpop.f32.mrb[16].mxu1 }
 0x1d6   :  { %v626_v11 = vpop.f32.mrb[17].mxu1 }
 0x1d7   :  { %v1614_v28 = vpop.f32.mrb[18].mxu1 }
 0x1d8   :  { %v754_v30 = vpack.c.bf16 %v1614_v28, %v1613_v62  ;;  %v629_v60 = vpop.f32.mrb[19].mxu1 }
 0x1d9   :  { %v753_v32 = vpack.c.bf16 %v629_v60, %v626_v11 }
 0x1da   :  { %v2206_v36 = vadd.bf16 %v2203_v27, %v754_v30 }
 0x1db   :  { %v2209_v37 = vadd.bf16 %v2203_v27, %v753_v32 }
 0x1dc   :  { %v1439_v40 = vmul.bf16 3216621497, %v2206_v36 }
 0x1dd   :  { %v1438_v42 = vmul.bf16 3216621497, %v2209_v37  ;;  %v1617_v45 = vpop.f32.mrb[20].mxu1 }
 0x1de   :  { %1792 = vpow.bf16 %v1439_v40  ;;  %v642_v48 = vpop.f32.mrb[21].mxu1 }
 0x1df   :  { %1794 = vpow.bf16 %v1438_v42  ;;  %v1618_v49 = vpop.f32.mrb[22].mxu1 }
 0x1e0   :  { %v756_v24 = vpack.c.bf16 %v1618_v49, %v1617_v45  ;;  %v645_v35 = vpop.f32.mrb[23].mxu1 }
 0x1e1   :  { %v755_v34 = vpack.c.bf16 %v645_v35, %v642_v48 }
 0x1e2   :  { %v2214_v38 = vadd.bf16 %v2203_v27, %v756_v24 }
 0x1e3   :  { %v2217_v53 = vadd.bf16 %v2203_v27, %v755_v34 }
 0x1e4   :  { %v1441_v33 = vmul.bf16 3216621497, %v2214_v38 }
 0x1e5   :  { %v1440_v39 = vmul.bf16 3216621497, %v2217_v53  ;;  %v1621_v18 = vpop.f32.mrb[24].mxu1 }
 0x1e6   :  { %1796 = vpow.bf16 %v1441_v33  ;;  %v658_v41 = vpop.f32.mrb[25].mxu1 }
 0x1e7   :  { %1798 = vpow.bf16 %v1440_v39  ;;  %v1622_v54 = vpop.f32.mrb[26].mxu1 }
 0x1e8   :  { %v758_v55 = vpack.c.bf16 %v1622_v54, %v1621_v18  ;;  %v661_v57 = vpop.f32.mrb[27].mxu1 }
 0x1e9   :  { %v1793_v14 = vpop.eup %1792  ;;  %v757_v1 = vpack.c.bf16 %v661_v57, %v658_v41 }
 0x1ea   :  { %v1795_v61 = vpop.eup %1794  ;;  %v857_v63 = vadd.bf16 1065369472, %v1793_v14  ;;  %v2222_v4 = vadd.bf16 %v2203_v27, %v758_v55 }
 0x1eb   :  { %v856_v2 = vadd.bf16 1065369472, %v1795_v61  ;;  %v2225_v5 = vadd.bf16 %v2203_v27, %v757_v1 }
 0x1ec   :  { %1800 = vrcp.bf16 %v857_v63  ;;  %v1443_v52 = vmul.bf16 3216621497, %v2222_v4 }
 0x1ed   :  { %1802 = vrcp.bf16 %v856_v2  ;;  %v1442_v6 = vmul.bf16 3216621497, %v2225_v5  ;;  %v1625_v47 = vpop.f32.mrb[28].mxu1 }
 0x1ee   :  { %1804 = vpow.bf16 %v1443_v52  ;;  %v674_v7 = vpop.f32.mrb[29].mxu1 }
 0x1ef   :  { %1806 = vpow.bf16 %v1442_v6  ;;  %v1626_v17 = vpop.f32.mrb[30].mxu1 }
 0x1f0   :  { %v760_v51 = vpack.c.bf16 %v1626_v17, %v1625_v47  ;;  %v677_v56 = vpop.f32.mrb[31].mxu1 }
 0x1f1   :  { %v1797_v9 = vpop.eup %1796  ;;  %v759_v12 = vpack.c.bf16 %v677_v56, %v674_v7 }
 0x1f2   :  { %v1799_v58 = vpop.eup %1798  ;;  %v859_v10 = vadd.bf16 1065369472, %v1797_v9  ;;  %v2230_v13 = vadd.bf16 %v2203_v27, %v760_v51 }
 0x1f3   :  { %v858_v43 = vadd.bf16 1065369472, %v1799_v58  ;;  %v2233_v50 = vadd.bf16 %v2203_v27, %v759_v12 }
 0x1f4   :  { %1808 = vrcp.bf16 %v859_v10  ;;  %v1445_v46 = vmul.bf16 3216621497, %v2230_v13 }
 0x1f5   :  { %1810 = vrcp.bf16 %v858_v43  ;;  %v1444_v15 = vmul.bf16 3216621497, %v2233_v50  ;;  %v1629_v19 = vpop.f32.mrb[32].mxu1 }
 0x1f6   :  { %1812 = vpow.bf16 %v1445_v46  ;;  %v690_v0 = vpop.f32.mrb[33].mxu1 }
 0x1f7   :  { %v1801_v59 = vpop.eup %1800  ;;  %1814 = vpow.bf16 %v1444_v15  ;;  %v1630_v20 = vpop.f32.mrb[34].mxu1 }
 0x1f8   :  { %v1803_v44 = vpop.eup %1802  ;;  %v875_v16 = vmul.bf16 1065369472, %v1801_v59  ;;  %v762_v21 = vpack.c.bf16 %v1630_v20, %v1629_v19  ;;  %v693_v22 = vpop.f32.mrb[35].mxu1 }
 0x1f9   :  { %v873_v23 = vmul.bf16 1065369472, %v1803_v44  ;;  %v1805_v25 = vpop.eup %1804  ;;  %v761_v3 = vpack.c.bf16 %v693_v22, %v690_v0 }
 0x1fa   :  { %v1807_v8 = vpop.eup %1806  ;;  %v861_v62 = vadd.bf16 1065369472, %v1805_v25  ;;  %v2238_v11 = vadd.bf16 %v2203_v27, %v762_v21  ;;  %v905_v30 = vmul.bf16 %v875_v16, %v2206_v36 }
 0x1fb   :  { %v904_v28 = vmul.bf16 %v873_v23, %v2209_v37  ;;  %v860_v60 = vadd.bf16 1065369472, %v1807_v8  ;;  %v2243_v32 = vadd.bf16 %v2203_v27, %v761_v3 }
 0x1fc   :  { %1816 = vrcp.bf16 %v861_v62  ;;  %v1447_v40 = vmul.bf16 3216621497, %v2238_v11 }
 0x1fd   :  { %1659 = vmatprep.mubr.bf16.mxu0 %v904_v28  ;;  %1818 = vrcp.bf16 %v860_v60  ;;  %v1446_v42 = vmul.bf16 3216621497, %v2243_v32  ;;  %v1633_v45 = vpop.f32.mrb[36].mxu1 }
 0x1fe   :  { %1660 = vmatmul.mubr.bf16.vlgmr.msra.gmra.mrb[16].mxu0 %v905_v30  ;;  %1820 = vpow.bf16 %v1447_v40  ;;  %v706_v49 = vpop.f32.mrb[37].mxu1 }
 0x1ff   :  { %v1809_v48 = vpop.eup %1808  ;;  %1822 = vpow.bf16 %v1446_v42  ;;  %v1634_v37 = vpop.f32.mrb[38].mxu1 }
 0x200   :  { %v1811_v24 = vpop.eup %1810  ;;  %v879_v36 = vmul.bf16 1065369472, %v1809_v48  ;;  %v764_v35 = vpack.c.bf16 %v1634_v37, %v1633_v45  ;;  %v709_v34 = vpop.f32.mrb[39].mxu1 }
 0x201   :  { %v877_v33 = vmul.bf16 1065369472, %v1811_v24  ;;  %v1813_v39 = vpop.eup %1812  ;;  %v763_v18 = vpack.c.bf16 %v709_v34, %v706_v49 }
 0x202   :  { %v1815_v41 = vpop.eup %1814  ;;  %v863_v54 = vadd.bf16 1065369472, %v1813_v39  ;;  %v2248_v14 = vadd.bf16 %v2203_v27, %v764_v35  ;;  %v907_v63 = vmul.bf16 %v879_v36, %v2214_v38 }
 0x203   :  { %v906_v55 = vmul.bf16 %v877_v33, %v2217_v53  ;;  %v862_v57 = vadd.bf16 1065369472, %v1815_v41  ;;  %v2252_v61 = vadd.bf16 %v2203_v27, %v763_v18 }
 0x204   :  { %1824 = vrcp.bf16 %v863_v54  ;;  %v1449_v1 = vmul.bf16 3216621497, %v2248_v14 }
 0x205   :  { %1663 = vmatprep.mubr.bf16.mxu0 %v906_v55  ;;  %1826 = vrcp.bf16 %v862_v57  ;;  %v1448_v2 = vmul.bf16 3216621497, %v2252_v61  ;;  %v1637_v52 = vpop.f32.mrb[40].mxu1 }
 0x206   :  { %1664 = vmatmul.mubr.bf16.gmra.mrb[20].mxu0 %v907_v63  ;;  %1828 = vpow.bf16 %v1449_v1  ;;  %v722_v6 = vpop.f32.mrb[41].mxu1 }
 0x207   :  { %v1817_v47 = vpop.eup %1816  ;;  %1830 = vpow.bf16 %v1448_v2  ;;  %v1638_v53 = vpop.f32.mrb[42].mxu1 }
 0x208   :  { %v1819_v7 = vpop.eup %1818  ;;  %v766_v17 = vpack.c.bf16 %v1638_v53, %v1637_v52  ;;  %v725_v9 = vpop.f32.mrb[43].mxu1  ;;  %v883_v51 = vmul.bf16 1065369472, %v1817_v47 }
 0x209   :  { %v1821_v56 = vpop.eup %1820  ;;  %v765_v38 = vpack.c.bf16 %v725_v9, %v722_v6  ;;  %v881_v58 = vmul.bf16 1065369472, %v1819_v7 }
 0x20a   :  { %v1823_v10 = vpop.eup %1822  ;;  %v865_v12 = vadd.bf16 1065369472, %v1821_v56  ;;  %v2258_v43 = vadd.bf16 %v2203_v27, %v766_v17  ;;  %v909_v0 = vmul.bf16 %v883_v51, %v2222_v4 }
 0x20b   :  { %v864_v46 = vadd.bf16 1065369472, %v1823_v10  ;;  %v2261_v15 = vadd.bf16 %v2203_v27, %v765_v38  ;;  %v908_v19 = vmul.bf16 %v881_v58, %v2225_v5 }
 0x20c   :  { %1832 = vrcp.bf16 %v865_v12  ;;  %v1451_v59 = vmul.bf16 3216621497, %v2258_v43 }
 0x20d   :  { %1834 = vrcp.bf16 %v864_v46  ;;  %v1450_v44 = vmul.bf16 3216621497, %v2261_v15  ;;  %v1641_v16 = vpop.f32.mrb[44].mxu1  ;;  %1667 = vmatprep.mubr.bf16.mxu0 %v908_v19  ;;  %v32_v19 = vld [vmem:[%s2413_s4 + $0x3] sm:$0x1] }
 0x20e   :  { %1836 = vpow.bf16 %v1451_v59  ;;  %v738_v20 = vpop.f32.mrb[45].mxu1  ;;  %1668 = vmatmul.mubr.bf16.gmra.mrb[24].mxu0 %v909_v0 }
 0x20f   :  { %v1825_v21 = vpop.eup %1824  ;;  %1838 = vpow.bf16 %v1450_v44  ;;  %v1642_v22 = vpop.f32.mrb[46].mxu1 }
 0x210   :  { %v1827_v23 = vpop.eup %1826  ;;  %v768_v25 = vpack.c.bf16 %v1642_v22, %v1641_v16  ;;  %v741_v3 = vpop.f32.mrb[47].mxu1  ;;  %v887_v5 = vmul.bf16 1065369472, %v1825_v21 }
 0x211   :  { %v1829_v8 = vpop.eup %1828  ;;  %v767_v62 = vpack.c.bf16 %v741_v3, %v738_v20  ;;  %v885_v28 = vmul.bf16 1065369472, %v1827_v23 }
 0x212   :  { %v1831_v30 = vpop.eup %1830  ;;  %v867_v4 = vadd.bf16 1065369472, %v1829_v8  ;;  %v791_v60 = vadd.bf16 %v2203_v27, %v768_v25  ;;  %v911_v49 = vmul.bf16 %v887_v5, %v2230_v13  ;;  %v30_v25 = vld [vmem:[%s2413_s4 + $0x2] sm:$0x1] }
 0x213   :  { %v866_v40 = vadd.bf16 1065369472, %v1831_v30  ;;  %v790_v42 = vadd.bf16 %v2203_v27, %v767_v62  ;;  %v910_v45 = vmul.bf16 %v885_v28, %v2233_v50  ;;  %v31_v3 = vpack.c.bf16 %v30_v25, %v30_v25 }
 0x214   :  { %1840 = vrcp.bf16 %v867_v4  ;;  %v1453_v48 = vmul.bf16 3216621497, %v791_v60 }
 0x215   :  { %1842 = vrcp.bf16 %v866_v40  ;;  %v1452_v24 = vmul.bf16 3216621497, %v790_v42  ;;  %1671 = vmatprep.mubr.bf16.mxu0 %v910_v45  ;;  %v1162_v28 = vpack.i.b16 %v31_v3, %v31_v3 }
 0x216   :  { %1844 = vpow.bf16 %v1453_v48  ;;  %1672 = vmatmul.mubr.bf16.gmra.mrb[28].mxu0 %v911_v49 }
 0x217   :  { %v1833_v37 = vpop.eup %1832  ;;  %1846 = vpow.bf16 %v1452_v24  ;;  %v2299_v40 = vrot.slane %v1162_v28, %v2054_v31 }
 0x218   :  { %v1835_v36 = vpop.eup %1834  ;;  %v891_v35 = vmul.bf16 1065369472, %v1833_v37 }
 0x219   :  { %v1837_v34 = vpop.eup %1836  ;;  %v889_v33 = vmul.bf16 1065369472, %v1835_v36 }
 0x21a   :  { %v1839_v39 = vpop.eup %1838  ;;  %v869_v18 = vadd.bf16 1065369472, %v1837_v34  ;;  %v913_v41 = vmul.bf16 %v891_v35, %v2238_v11 }
 0x21b   :  { %v868_v27 = vadd.bf16 1065369472, %v1839_v39  ;;  %v912_v50 = vmul.bf16 %v889_v33, %v2243_v32 }
 0x21c   :  { %1848 = vrcp.bf16 %v869_v18 }
 0x21d   :  { %1850 = vrcp.bf16 %v868_v27  ;;  %1675 = vmatprep.mubr.bf16.mxu0 %v912_v50 }
 0x21e   :  { %1676 = vmatmul.mubr.bf16.gmra.mrb[32].mxu0 %v913_v41 }
 0x21f   :  { %v1841_v13 = vpop.eup %1840 }
 0x220   :  { %v1843_v54 = vpop.eup %1842  ;;  %v895_v55 = vmul.bf16 1065369472, %v1841_v13 }
 0x221   :  { %v1845_v57 = vpop.eup %1844  ;;  %v893_v63 = vmul.bf16 1065369472, %v1843_v54 }
 0x222   :  { %v1847_v1 = vpop.eup %1846  ;;  %v871_v2 = vadd.bf16 1065369472, %v1845_v57  ;;  %v915_v47 = vmul.bf16 %v895_v55, %v2248_v14 }
 0x223   :  { %v870_v52 = vadd.bf16 1065369472, %v1847_v1  ;;  %v914_v6 = vmul.bf16 %v893_v63, %v2252_v61 }
 0x224   :  { %1852 = vrcp.bf16 %v871_v2 }
 0x225   :  { %1854 = vrcp.bf16 %v870_v52  ;;  %1679 = vmatprep.mubr.bf16.mxu0 %v914_v6 }
 0x226   :  { %1680 = vmatmul.mubr.bf16.gmra.mrb[36].mxu0 %v915_v47 }
 0x227   :  { %v1849_v11 = vpop.eup %1848 }
 0x228   :  { %v1851_v32 = vpop.eup %1850  ;;  %v899_v53 = vmul.bf16 1065369472, %v1849_v11 }
 0x229   :  { %v897_v7 = vmul.bf16 1065369472, %v1851_v32 }
 0x22a   :  { %v917_v9 = vmul.bf16 %v899_v53, %v2258_v43  ;;  %v2280_v43 = vpack.c.bf16 %v32_v19, %v32_v19 }
 0x22b   :  { %v916_v17 = vmul.bf16 %v897_v7, %v2261_v15 }
 0x22c   :  { %1559 = vmatprep.mubr.bf16.mxu1 %v2280_v43 }
 0x22d   :  { %1683 = vmatprep.mubr.bf16.mxu0 %v916_v17 }
 0x22e   :  { %1684 = vmatmul.mubr.bf16.gmra.mrb[40].mxu0 %v917_v9 }
 0x22f   :  { %v1853_v51 = vpop.eup %1852 }
 0x230   :  { %v1855_v56 = vpop.eup %1854  ;;  %v903_v38 = vmul.bf16 1065369472, %v1853_v51 }
 0x231   :  { %v901_v61 = vmul.bf16 1065369472, %v1855_v56 }
 0x232   :  { %v919_v10 = vmul.bf16 %v903_v38, %v791_v60 }
 0x233   :  { %v918_v58 = vmul.bf16 %v901_v61, %v790_v42 }
 0x235   :  { %1687 = vmatprep.mubr.bf16.mxu0 %v918_v58 }
 0x236   :  { %1688 = vmatmul.mubr.bf16.gmra.mrb[44].mxu0 %v919_v10 }
 0x2d1   :  { %v1661_v14 = vpop.f32.mrb[16].mxu0 }
 0x2d2   :  { %v1018_v12 = vpop.f32.mrb[17].mxu0 }
 0x2d3   :  { %v1662_v46 = vpop.f32.mrb[18].mxu0 }
 0x2d4   :  { %v1146_v15 = vpack.c.bf16 %v1662_v46, %v1661_v14  ;;  %v1021_v59 = vpop.f32.mrb[19].mxu0 }
 0x2d5   :  { %v1145_v0 = vpack.c.bf16 %v1021_v59, %v1018_v12 }
 0x2d6   :  { %v2318_v39 = vadd.bf16 %v2299_v40, %v1146_v15 }
 0x2d7   :  { %v2308_v49 = vadd.bf16 %v2299_v40, %v1145_v0 }
 0x2d8   :  { %v1463_v54 = vmul.bf16 3216621497, %v2318_v39 }
 0x2d9   :  { %v1665_v44 = vpop.f32.mrb[20].mxu0  ;;  %v1462_v31 = vmul.bf16 3216621497, %v2308_v49 }
 0x2da   :  { %v1034_v16 = vpop.f32.mrb[21].mxu0 }
 0x2db   :  { %v1666_v20 = vpop.f32.mrb[22].mxu0  ;;  %1856 = vpow.bf16 %v1462_v31 }
 0x2dc   :  { %v1148_v21 = vpack.c.bf16 %v1666_v20, %v1665_v44  ;;  %v1037_v22 = vpop.f32.mrb[23].mxu0 }
 0x2dd   :  { %v1147_v23 = vpack.c.bf16 %v1037_v22, %v1034_v16 }
 0x2de   :  { %v2342_v10 = vadd.bf16 %v2299_v40, %v1148_v21 }
 0x2df   :  { %v2330_v52 = vadd.bf16 %v2299_v40, %v1147_v23 }
 0x2e0   :  { %v1465_v20 = vmul.bf16 3216621497, %v2342_v10 }
 0x2e1   :  { %v2286_v5 = vpop.f32.mrb[24].mxu0  ;;  %v1464_v17 = vmul.bf16 3216621497, %v2330_v52 }
 0x2e2   :  { %v2288_v8 = vpop.f32.mrb[25].mxu0 }
 0x2e3   :  { %v2290_v62 = vpop.f32.mrb[26].mxu0 }
 0x2e4   :  { %v1150_v30 = vpack.c.bf16 %v2290_v62, %v2286_v5  ;;  %v2294_v4 = vpop.f32.mrb[27].mxu0 }
 0x2e5   :  { %v1149_v60 = vpack.c.bf16 %v2294_v4, %v2288_v8 }
 0x2e6   :  { %v1857_v53 = vpop.eup %1856 }
 0x2e7   :  { %v1248_v38 = vadd.bf16 1065369472, %v1857_v53  ;;  %v2353_v28 = vadd.bf16 %v2299_v40, %v1149_v60 }
 0x2e9   :  { %v2301_v42 = vpop.f32.mrb[28].mxu0 }
 0x2ea   :  { %v2303_v45 = vpop.f32.mrb[29].mxu0 }
 0x2eb   :  { %v2305_v48 = vpop.f32.mrb[30].mxu0 }
 0x2ec   :  { %v1152_v24 = vpack.c.bf16 %v2305_v48, %v2301_v42  ;;  %v2312_v37 = vpop.f32.mrb[31].mxu0 }
 0x2ed   :  { %v1151_v36 = vpack.c.bf16 %v2312_v37, %v2303_v45 }
 0x2f1   :  { %v1677_v35 = vpop.f32.mrb[32].mxu0 }
 0x2f2   :  { %v1082_v34 = vpop.f32.mrb[33].mxu0 }
 0x2f3   :  { %v1678_v33 = vpop.f32.mrb[34].mxu0 }
 0x2f4   :  { %v1154_v18 = vpack.c.bf16 %v1678_v33, %v1677_v35  ;;  %v1085_v27 = vpop.f32.mrb[35].mxu0 }
 0x2f5   :  { %v1153_v50 = vpack.c.bf16 %v1085_v27, %v1082_v34 }
 0x2f6   :  { %v2321_v41 = vadd.bf16 %v2299_v40, %v1154_v18 }
 0x2f7   :  { %v2324_v13 = vadd.bf16 %v2299_v40, %v1153_v50 }
 0x2f8   :  { %v1471_v55 = vmul.bf16 3216621497, %v2321_v41 }
 0x2f9   :  { %v1470_v57 = vmul.bf16 3216621497, %v2324_v13  ;;  %v1681_v63 = vpop.f32.mrb[36].mxu0 }
 0x2fa   :  { %1858 = vpow.bf16 %v1471_v55  ;;  %v1098_v1 = vpop.f32.mrb[37].mxu0  ;;  %v1466_v55 = vmul.bf16 3216621497, %v2353_v28 }
 0x2fb   :  { %1860 = vpow.bf16 %v1470_v57  ;;  %v1682_v2 = vpop.f32.mrb[38].mxu0 }
 0x2fc   :  { %1862 = vpow.bf16 %v1463_v54  ;;  %v1156_v6 = vpack.c.bf16 %v1682_v2, %v1681_v63  ;;  %v1101_v47 = vpop.f32.mrb[39].mxu0 }
 0x2fd   :  { %v1155_v11 = vpack.c.bf16 %v1101_v47, %v1098_v1 }
 0x2fe   :  { %v2333_v32 = vadd.bf16 %v2299_v40, %v1156_v6  ;;  %v2364_v6 = vadd.bf16 %v2299_v40, %v1150_v30 }
 0x2ff   :  { %v2336_v7 = vadd.bf16 %v2299_v40, %v1155_v11 }
 0x300   :  { %v1473_v9 = vmul.bf16 3216621497, %v2333_v32  ;;  %v1467_v5 = vmul.bf16 3216621497, %v2364_v6 }
 0x301   :  { %v1472_v51 = vmul.bf16 3216621497, %v2336_v7  ;;  %v1685_v56 = vpop.f32.mrb[40].mxu0 }
 0x302   :  { %v1114_v61 = vpop.f32.mrb[41].mxu0 }
 0x303   :  { %1864 = vpow.bf16 %v1472_v51  ;;  %v1686_v58 = vpop.f32.mrb[42].mxu0 }
 0x304   :  { %1866 = vpow.bf16 %v1464_v17  ;;  %v1158_v14 = vpack.c.bf16 %v1686_v58, %v1685_v56  ;;  %v1117_v12 = vpop.f32.mrb[43].mxu0 }
 0x305   :  { %v1859_v46 = vpop.eup %1858  ;;  %1868 = vpow.bf16 %v1473_v9  ;;  %v1157_v19 = vpack.c.bf16 %v1117_v12, %v1114_v61 }
 0x306   :  { %v1861_v15 = vpop.eup %1860  ;;  %1870 = vrcp.bf16 %v1248_v38  ;;  %v1257_v59 = vadd.bf16 1065369472, %v1859_v46  ;;  %v2356_v34 = vadd.bf16 %v2299_v40, %v1158_v14 }
 0x307   :  { %v1863_v0 = vpop.eup %1862  ;;  %v1256_v44 = vadd.bf16 1065369472, %v1861_v15  ;;  %v2345_v16 = vadd.bf16 %v2299_v40, %v1157_v19 }
 0x308   :  { %1872 = vrcp.bf16 %v1257_v59  ;;  %v1249_v23 = vadd.bf16 1065369472, %v1863_v0  ;;  %v1475_v8 = vmul.bf16 3216621497, %v2356_v34 }
 0x309   :  { %1874 = vrcp.bf16 %v1256_v44  ;;  %v1474_v21 = vmul.bf16 3216621497, %v2345_v16  ;;  %v1689_v22 = vpop.f32.mrb[44].mxu0 }
 0x30a   :  { %v1130_v25 = vpop.f32.mrb[45].mxu0  ;;  %1876 = vpow.bf16 %v1465_v20 }
 0x30b   :  { %v1690_v3 = vpop.f32.mrb[46].mxu0  ;;  %1878 = vpow.bf16 %v1474_v21 }
 0x30c   :  { %v1160_v31 = vpack.c.bf16 %v1690_v3, %v1689_v22  ;;  %v1133_v35 = vpop.f32.mrb[47].mxu0  ;;  %1880 = vrcp.bf16 %v1249_v23  ;;  %v1175_v22 = vadd.bf16 %v2299_v40, %v1152_v24 }
 0x30d   :  { %v1159_v33 = vpack.c.bf16 %v1133_v35, %v1130_v25 }
 0x30e   :  { %v1865_v18 = vpop.eup %1864  ;;  %v1469_v3 = vmul.bf16 3216621497, %v1175_v22 }
 0x30f   :  { %v1867_v27 = vpop.eup %1866  ;;  %v1258_v50 = vadd.bf16 1065369472, %v1865_v18  ;;  %v2367_v47 = vadd.bf16 %v2299_v40, %v1159_v33 }
 0x310   :  { %v1869_v54 = vpop.eup %1868  ;;  %v1250_v4 = vadd.bf16 1065369472, %v1867_v27 }
 0x311   :  { %v1871_v57 = vpop.eup %1870  ;;  %1882 = vrcp.bf16 %v1258_v50  ;;  %v1259_v63 = vadd.bf16 1065369472, %v1869_v54  ;;  %v1476_v30 = vmul.bf16 3216621497, %v2367_v47 }
 0x312   :  { %v1265_v2 = vmul.bf16 1065369472, %v1871_v57  ;;  %1884 = vpow.bf16 %v1466_v55 }
 0x313   :  { %v1873_v60 = vpop.eup %1872  ;;  %1886 = vpow.bf16 %v1475_v8 }
 0x314   :  { %v1875_v1 = vpop.eup %1874  ;;  %v1283_v53 = vmul.bf16 1065369472, %v1873_v60  ;;  %1888 = vrcp.bf16 %v1250_v4  ;;  %v1296_v56 = vmul.bf16 %v1265_v2, %v2308_v49  ;;  %v2378_v49 = vadd.bf16 %v2299_v40, %v1151_v36 }
 0x315   :  { %v1281_v11 = vmul.bf16 1065369472, %v1875_v1  ;;  %v1877_v17 = vpop.eup %1876  ;;  %1890 = vrcp.bf16 %v1259_v63 }
 0x316   :  { %v1879_v51 = vpop.eup %1878  ;;  %v1305_v38 = vmul.bf16 %v1283_v53, %v2321_v41  ;;  %v1251_v61 = vadd.bf16 1065369472, %v1877_v17  ;;  %1892 = vpow.bf16 %v1467_v5  ;;  %v1468_v59 = vmul.bf16 3216621497, %v2378_v49 }
 0x317   :  { %v1304_v9 = vmul.bf16 %v1281_v11, %v2324_v13  ;;  %v1881_v62 = vpop.eup %1880  ;;  %v1260_v58 = vadd.bf16 1065369472, %v1879_v51  ;;  %v2381_v13 = vadd.bf16 %v2299_v40, %v1160_v31  ;;  %1894 = vpow.bf16 %v1476_v30 }
 0x318   :  { %v1267_v12 = vmul.bf16 1065369472, %v1881_v62  ;;  %1896 = vrcp.bf16 %v1251_v61 }
 0x319   :  { %1543 = vmatprep.subr.bf16.mxu1 %v1304_v9  ;;  %1898 = vrcp.bf16 %v1260_v58  ;;  %v1477_v44 = vmul.bf16 3216621497, %v2381_v13 }
 0x31a   :  { %1544 = vmatpush3.bf16.xpose.msra.mxu1 %v1296_v56  ;;  %v1297_v15 = vmul.bf16 %v1267_v12, %v2318_v39  ;;  %1900 = vpow.bf16 %v1468_v59 }
 0x31b   :  { %1545 = vmatprep.subr.bf16.mxu1 %v1305_v38  ;;  %1902 = vpow.bf16 %v1477_v44 }
 0x31c   :  { %v1883_v14 = vpop.eup %1882 }
 0x31d   :  { %v1285_v46 = vmul.bf16 1065369472, %v1883_v14  ;;  %v1885_v41 = vpop.eup %1884 }
 0x31e   :  { %v1887_v19 = vpop.eup %1886  ;;  %v1252_v36 = vadd.bf16 1065369472, %v1885_v41 }
 0x31f   :  { %v1889_v0 = vpop.eup %1888  ;;  %v1306_v45 = vmul.bf16 %v1285_v46, %v2336_v7  ;;  %v1261_v20 = vadd.bf16 1065369472, %v1887_v19 }
 0x320   :  { %v1891_v37 = vpop.eup %1890  ;;  %v1269_v21 = vmul.bf16 1065369472, %v1889_v0  ;;  %1904 = vrcp.bf16 %v1252_v36 }
 0x321   :  { %v1287_v39 = vmul.bf16 1065369472, %v1891_v37  ;;  %v1893_v23 = vpop.eup %1892  ;;  %1906 = vrcp.bf16 %v1261_v20 }
 0x322   :  { %1546 = vmatpush3.bf16.xpose.msra.mxu1 %v1297_v15  ;;  %v1895_v25 = vpop.eup %1894  ;;  %v1298_v7 = vmul.bf16 %v1269_v21, %v2330_v52  ;;  %v1253_v18 = vadd.bf16 1065369472, %v1893_v23  ;;  %1908 = vpow.bf16 %v1469_v3 }
 0x323   :  { %1547 = vmatprep.subr.bf16.mxu1 %v1306_v45  ;;  %v1897_v31 = vpop.eup %1896  ;;  %v1307_v35 = vmul.bf16 %v1287_v39, %v2333_v32  ;;  %v1262_v27 = vadd.bf16 1065369472, %v1895_v25 }
 0x324   :  { %v1899_v33 = vpop.eup %1898  ;;  %v1271_v42 = vmul.bf16 1065369472, %v1897_v31  ;;  %1910 = vrcp.bf16 %v1253_v18 }
 0x325   :  { %v1289_v40 = vmul.bf16 1065369472, %v1899_v33  ;;  %v1901_v48 = vpop.eup %1900  ;;  %1912 = vrcp.bf16 %v1262_v27 }
 0x326   :  { %v1903_v24 = vpop.eup %1902  ;;  %v1299_v50 = vmul.bf16 %v1271_v42, %v2342_v10  ;;  %v1254_v57 = vadd.bf16 1065369472, %v1901_v48 }
 0x327   :  { %v1308_v52 = vmul.bf16 %v1289_v40, %v2345_v16  ;;  %v1263_v32 = vadd.bf16 1065369472, %v1903_v24 }
 0x328   :  { %1914 = vrcp.bf16 %v1254_v57 }
 0x329   :  { %1916 = vrcp.bf16 %v1263_v32 }
 0x32a   :  { %1548 = vmatpush3.bf16.xpose.msra.mxu1 %v1298_v7 }
 0x32b   :  { %1549 = vmatprep.subr.bf16.mxu1 %v1307_v35  ;;  %v1905_v54 = vpop.eup %1904 }
 0x32c   :  { %v1907_v55 = vpop.eup %1906  ;;  %v1273_v8 = vmul.bf16 1065369472, %v1905_v54 }
 0x32d   :  { %v1291_v4 = vmul.bf16 1065369472, %v1907_v55  ;;  %v1909_v60 = vpop.eup %1908 }
 0x32e   :  { %v1300_v63 = vmul.bf16 %v1273_v8, %v2353_v28  ;;  %v1255_v10 = vadd.bf16 1065369472, %v1909_v60 }
 0x32f   :  { %v1911_v1 = vpop.eup %1910  ;;  %v1309_v2 = vmul.bf16 %v1291_v4, %v2356_v34 }
 0x330   :  { %v1913_v11 = vpop.eup %1912  ;;  %v1275_v16 = vmul.bf16 1065369472, %v1911_v1  ;;  %1918 = vrcp.bf16 %v1255_v10 }
 0x331   :  { %v1293_v53 = vmul.bf16 1065369472, %v1913_v11 }
 0x332   :  { %1550 = vmatpush3.bf16.xpose.msra.mxu1 %v1299_v50  ;;  %v1301_v17 = vmul.bf16 %v1275_v16, %v2364_v6  ;;  %v1920_v6 = vmov 1966171168  }
 0x333   :  { %1551 = vmatprep.subr.bf16.mxu1 %v1308_v52  ;;  %v1915_v9 = vpop.eup %1914  ;;  %v1310_v51 = vmul.bf16 %v1293_v53, %v2367_v47  ;;  %v1359_v58 = vunpack.c.l.s4 %v1920_v6  ;;  %v1313_v47 = vstv %s2415_s5 }
 0x334   :  { %v1917_v56 = vpop.eup %1916  ;;  %v1277_v5 = vmul.bf16 1065369472, %v1915_v9 }
 0x335   :  { %v1295_v28 = vmul.bf16 1065369472, %v1917_v56  ;;  %v1360_v14 = vunpack.c.0.s8 %v1359_v58 }
 0x336   :  { %v1302_v62 = vmul.bf16 %v1277_v5, %v2378_v49 }
 0x337   :  { %v1311_v30 = vmul.bf16 %v1295_v28, %v2381_v13  ;;  %v1363_v13 = vsub.s32 %v1360_v14, %v2051_v29 }
 0x33a   :  { %1552 = vmatpush3.bf16.xpose.msra.mxu1 %v1300_v63 }
 0x33b   :  { %1553 = vmatprep.subr.bf16.mxu1 %v1309_v2  ;;  %v1919_v34 = vpop.eup %1918 }
 0x33c   :  { %v1279_v38 = vmul.bf16 1065369472, %v1919_v34 }
 0x33e   :  { %v1303_v61 = vmul.bf16 %v1279_v38, %v1175_v22 }
 0x342   :  { %1554 = vmatpush3.bf16.xpose.msra.mxu1 %v1301_v17 }
 0x343   :  { %1555 = vmatprep.subr.bf16.mxu1 %v1310_v51 }
 0x34a   :  { %1556 = vmatpush3.bf16.xpose.msra.mxu1 %v1302_v62 }
 0x34b   :  { %1557 = vmatprep.subr.bf16.mxu1 %v1311_v30 }
 0x352   :  { %1558 = vmatpush3.bf16.xpose.msra.mxu1 %v1303_v61 }
 0x359   :  { %1560 = vmatmul.mubr.bf16.vlgmr.msra.gmra.mrb[48].mxu1 %v2280_v43 }
 0x42c   :  { %v1348_v12 = vpop.f32.mrb[48].mxu1 }
 0x42d   :  { %v1349_v46 = vadd.f32 %v1348_v12, %v1313_v47  ;;  %v1350_v49 = vpop.f32.mrb[49].mxu1 }
 0x42e   :  { %v1351_v41 = vadd.f32 %v1350_v49, %v1313_v47  ;;  %v1352_v19 = vpop.f32.mrb[50].mxu1 }
 0x42f   :  { %v1353_v15 = vpop.f32.mrb[51].mxu1 }
 0x430   :  { %v1357_v59 = vcombine.low %v1349_v46, %v1351_v41 }
 0x432   :  { %v1364_v0 = vrot.slane %v1357_v59, %v1363_v13 }
 0x434   :  { %v1371_v43 = vrot.slane %v1364_v0, %v1363_v13 }
 0x436   :  { %1377 = vst.msk [vmem:[%s2416_s6] sm:$0x3] %vm1375_vm2, %v1371_v43 }

</bundles_post_ra>
